<compile_context>
chip_gen: v6e
topology: v6e:2x2x1
jax: 0.10.0
libtpu: 0.0.40
codegen_flags: <defaults>
</compile_context>

<pallas_src>
import jax
import jax.numpy as jnp
from jax.experimental import pallas as pl
from jax.experimental.pallas import tpu as pltpu

_LANE = 128
_MIB = 1024 * 1024


def _maxpool_kernel(x_ref, o_ref):
    """x_ref: (tr, tc, k) with the pool window k as the (full) minor dim.
    o_ref: (tr, tc)."""
    o_ref[...] = jnp.max(x_ref[...], axis=-1)


def _round_up(a: int, b: int) -> int:
    return ((a + b - 1) // b) * b


def _pick_tile(extent: int, quantum: int, max_tile: int) -> int:
    """Largest tile <= max_tile that is a multiple of `quantum`, preferring one
    that evenly divides `extent` (avoids masked partial tail blocks)."""
    if extent <= max_tile:
        return extent
    max_tile = max(quantum, (max_tile // quantum) * quantum)
    t = max_tile
    lo = max(quantum, max_tile // 2)
    while t >= lo:                      # bounded host-side divisor search
        if extent % t == 0:
            return t
        t -= quantum
    return max_tile


def _vmem_capacity_bytes() -> int:
    try:
        return int(pltpu.get_tpu_info().vmem_capacity_bytes)
    except Exception:
        return 64 * _MIB                # conservative fallback (v7x per-core)


def _choose_tiles(R: int, S: int, k: int, itemsize: int, vmem_cap: int):
    """Pick (tr, tc): rows x windows per block.

    Input block VMEM footprint is tr * round8(tc) * round128(k) * itemsize
    (the minor dim k is lane-padded in VMEM); HBM traffic per block is the
    unpadded tr * tc * k * itemsize.
    """
    sub = max(8, 32 // max(1, itemsize))      # sublane quantum for this dtype
    pad_k = _round_up(k, _LANE)               # lane-padded window width in VMEM
    cell = pad_k * itemsize                   # VMEM bytes per (row, window) cell

    # Generation-aware per-block VMEM budget for the (double-buffered) input:
    # bigger blocks on 128 MiB parts (v5e/v6e), smaller on 64 MiB (v7x).  Scale
    # up with the padding factor so the *logical* (HBM) block stays big enough
    # to amortize the ~0.35us per-grid-step overhead, but never past a ceiling
    # that keeps 2*(in+out)+slack well inside physical VMEM.
    base = 16 * _MIB if vmem_cap >= 96 * _MIB else 8 * _MIB
    ceiling = max(2 * _MIB, (vmem_cap - 16 * _MIB) * 2 // 5)
    want = int(3 * _MIB * pad_k / max(1, k))
    in_budget = min(ceiling, max(base, want))

    # Column tile (windows per block) == output lane width: full S if it fits,
    # otherwise a multiple of 128 that (preferably) divides S.
    if S <= 2 * _LANE or sub * _round_up(S, sub) * cell <= in_budget:
        tc = S
    else:
        max_tc = max(_LANE, in_budget // (sub * cell))
        tc = _pick_tile(S, _LANE, max_tc)

    # Row tile from whatever budget is left per row (tr only needs to be a
    # multiple of the sublane quantum -- or the full extent -- because it is
    # the second-to-last dim of the *output* block).
    row_bytes = _round_up(tc, sub) * cell
    max_tr = max(1, in_budget // row_bytes)
    if max_tr >= R:
        tr = R
    else:
        tr = min(R, max(sub, _pick_tile(R, sub, max_tr)))

    # v7x megacore: guarantee >= 2 grid blocks for non-trivial inputs so both
    # TensorCores get work (harmless on single-core v5e/v6e).
    total_bytes = R * S * k * itemsize
    if total_bytes > (1 * _MIB) and pl.cdiv(R, tr) * pl.cdiv(S, tc) < 2:
        if R > sub:
            half = _round_up(pl.cdiv(R, 2), sub)
            if half < R:
                tr = half
        if pl.cdiv(R, tr) * pl.cdiv(S, tc) < 2 and S > _LANE:
            half = _round_up(pl.cdiv(S, 2), _LANE)
            if half < S:
                tc = half

    return tr, tc, sub, pad_k


def maxpool_forward(x: jax.Array, k: int) -> jax.Array:
    """Equivalent of maxpool(k).forward(x): nn.MaxPool2d((1, k)) then .squeeze(-1)."""
    assert x.ndim == 4, "expected NCHW input (B, C, H, W)"
    B, C, H, W = x.shape
    if k < 1 or W < k:
        raise ValueError(f"pool window k={k} must satisfy 1 <= k <= W={W}")
    n_out = W // k

    def _finalize(pooled_flat):
        pooled = pooled_flat.reshape(B, C, H, n_out)
        # .squeeze(-1) only drops the last dim when it has size 1.
        return pooled.reshape(B, C, H) if n_out == 1 else pooled

    # k == 1 is a pure copy: skip the kernel entirely (saves a full HBM
    # read + write pass).
    if k == 1:
        return _finalize(x)

    # PyTorch MaxPool2d floors W/k and silently drops the tail; slice it off
    # up front (only costs an extra XLA copy in the rare non-divisible case).
    if W % k:
        x = x[..., : n_out * k]

    R = B * C                  # outer rows (unconstrained dim of input blocks)
    S = H * n_out              # pooled windows per row -> lane-dense output dim
    itemsize = jnp.dtype(x.dtype).itemsize

    # Free reshape (contiguous): window elements become the minor axis.
    x3 = x.reshape(R, S, k)

    vmem_cap = _vmem_capacity_bytes()
    tr, tc, sub, pad_k = _choose_tiles(R, S, k, itemsize, vmem_cap)
    grid = (pl.cdiv(R, tr), pl.cdiv(S, tc))

    # VMEM limit from the actual (double-buffered) working set, with headroom.
    in_block = tr * _round_up(tc, sub) * pad_k * itemsize
    out_block = _round_up(tr, sub) * _round_up(tc, _LANE) * itemsize
    vmem_limit = min(vmem_cap,
                     max(16 * _MIB, 2 * (in_block + out_block) + 4 * _MIB))

    cost = pl.CostEstimate(
        flops=R * S * (k - 1),                       # (k-1) max ops per window
        transcendentals=0,
        bytes_accessed=(R * S * k + R * S) * itemsize,
    )

    pooled2 = pl.pallas_call(
        _maxpool_kernel,
        out_shape=jax.ShapeDtypeStruct((R, S), x.dtype),
        grid_spec=pltpu.PrefetchScalarGridSpec(
            num_scalar_prefetch=0,
            grid=grid,
            in_specs=[pl.BlockSpec((tr, tc, k), lambda i, j: (i, j, 0))],
            out_specs=pl.BlockSpec((tr, tc), lambda i, j: (i, j)),
        ),
        compiler_params=pltpu.CompilerParams(
            dimension_semantics=("parallel", "parallel"),
            vmem_limit_bytes=int(vmem_limit),
        ),
        cost_estimate=cost,
    )(x3)

    return _finalize(pooled2)


if __name__ == "__main__":
    # Small shapes consistent with PointNet2 usage:
    # x: (batch, channels, npoint, nsample) = (2, 4, 16, 16).
    B, C, H, W = 2, 4, 16, 16
    key = jax.random.PRNGKey(0)
    x = jax.random.normal(key, (B, C, H, W), dtype=jnp.float32)

    # Typical PointNet2 case: k == nsample == W -> output squeezed to (B, C, H).
    out_full = jax.block_until_ready(maxpool_forward(x, k=W))
    ref_full = jnp.max(x, axis=-1)
    assert out_full.shape == ref_full.shape
    assert jnp.allclose(out_full, ref_full), "mismatch vs reference (k == W)"

    # General case: k < W with W % k == 0 -> output (B, C, H, W // k).
    k = 8
    out_win = jax.block_until_ready(maxpool_forward(x, k=k))
    ref_win = jnp.max(x.reshape(B, C, H, W // k, k), axis=-1)
    assert out_win.shape == ref_win.shape
    assert jnp.allclose(out_win, ref_win), "mismatch vs reference (k < W)"

    # Non-divisible case: PyTorch floors W/k and drops the tail.
    k = 5
    out_fl = jax.block_until_ready(maxpool_forward(x, k=k))
    ref_fl = jnp.max(x[..., : (W // k) * k].reshape(B, C, H, W // k, k), axis=-1)
    assert out_fl.shape == ref_fl.shape
    assert jnp.allclose(out_fl, ref_fl), "mismatch vs reference (floor path)"

    # k == 1 fast path: pure copy, no kernel launch.
    out_id = jax.block_until_ready(maxpool_forward(x, k=1))
    assert out_id.shape == x.shape and jnp.allclose(out_id, x)

    print("KERNEL_OK")
</pallas_src>

<mosaic_0001>
module attributes {stable_mosaic.version = 11 : i64} {
  func.func @_maxpool_kernel(%arg0: i32, %arg1: i32, %arg2: memref<8x16x16xf32, #tpu.memory_space<vmem>>, %arg3: memref<8x16xf32, #tpu.memory_space<vmem>>) attributes {dimension_semantics = [#tpu.dimension_semantics<parallel>, #tpu.dimension_semantics<parallel>], iteration_bounds = array<i64: 1, 1>, scalar_prefetch = 0 : i64, scratch_operands = 0 : i64, tpu.core_type = #tpu.core_type<tc>, window_params = [{transform_indices = @transform_0, window_bounds = array<i64: 8, 16, 16>}, {transform_indices = @transform_1, window_bounds = array<i64: 8, 16>}]} {
    %c0 = arith.constant 0 : index
    %c0_0 = arith.constant 0 : index
    %c0_1 = arith.constant 0 : index
    %0 = vector.load %arg2[%c0, %c0_0, %c0_1] : memref<8x16x16xf32, #tpu.memory_space<vmem>>, vector<8x16x16xf32>
    %cst = arith.constant dense<0xFF800000> : vector<8x16xf32>
    %1 = vector.multi_reduction <maximumf>, %0, %cst [2] : vector<8x16x16xf32> to vector<8x16xf32>
    %c0_2 = arith.constant 0 : index
    %c0_3 = arith.constant 0 : index
    %2 = vector.load %arg3[%c0_2, %c0_3] : memref<8x16xf32, #tpu.memory_space<vmem>>, vector<8x16xf32>
    tpu.vector_store %arg3[%c0_2, %c0_3], %1 {strides = array<i32>} : memref<8x16xf32, #tpu.memory_space<vmem>>, vector<8x16xf32>,
    return
  }
  func.func @transform_0(%arg0: i32, %arg1: i32) -> (i32, i32, i32) {
    %c0_i32 = arith.constant 0 : i32
    %c0_i32_0 = arith.constant 0 : i32
    return %arg0, %arg1, %c0_i32 : i32, i32, i32
  }
  func.func @transform_1(%arg0: i32, %arg1: i32) -> (i32, i32) {
    %c0_i32 = arith.constant 0 : i32
    return %arg0, %arg1 : i32, i32
  }
}

</mosaic_0001>

<bundles_post_ra>
// kernel: tpu_custom_call.1
= control target key start
LH: loop header
LB: loop body
LE: loop exit
PB: predicated region body
PF: predicated region fallthrough
CT: control target
= control target key end

     0   :  { %6 = vsyncpa [#allocation3], 0  ;;  %s304_s0 = inlined_call_operand.hbm [shape: f32[8,16,16], index: 0, kind: input, shape index: {}]   ;;  %s305_s1 = inlined_call_operand.hbm [shape: f32[8,16], index: 1, kind: output, shape index: {}]  }
   0x1   :  { %7 = vsyncpa [#allocation4], 0  ;;  %s259_s6 = smov [#allocation2]  }
   0x2   :  { %s13_s7 = sshll.u32 %s259_s6, 4  ;;  %s14_s7 = int_to_ptr.vmem [resolvable:$true] %s13_s7 }
   0x3   :  { %s223_s8 = scalar_lea.vmem %s14_s7, 2048  ;;  %p228_p1 = scmp.lt.s32.totalorder %s14_s7, %s14_s7 }
   0x4   :  { %p224_p0 = scmp.ne.s32.totalorder %s14_s7, %s223_s8  ;;  %p229_p2 = scmp.lt.s32.totalorder %s223_s8, %s223_s8 }
   0x6   :  { %p230_p3 = por %p229_p2, %p228_p1 }
   0x8   :  { %p231_p4 = pnand %p230_p3, %p224_p0 }
   0xa   :  { %234 = shalt.err (!%p231_p4)
}
   0xb   :  { %s260_s9 = smov 128   ;;  %s261_s10 = smov 8  }
   0xc   :  { %19 = dma.hbm_to_vmem [thread:$0]  %s304_s0, 2048, %s14_s7, [#allocation3], %s260_s9, %s260_s9, %s261_s10  }
   0xd   :  { %255 = dma.done.wait [#allocation3], 2048  }
   0xe   :  { %256 = vsyncadd [#allocation3], 4294965248  ;;  %vm39_vm0 = vcmask 130048   ;;  %v25_v0 = vld [vmem:[#allocation2 + $0x10] sm:$0xff]  ;;  %v23_v1 = vld [vmem:[#allocation2] sm:$0xff]  ;;  %v104_v36 = vlaneseq  ;;  %vm115_vm1 = vcmask 130112  }
   0xf   :  { %v26_v2 = vld [vmem:[#allocation2 + $0x18] sm:$0xff]  ;;  %v46_v3 = vsel %vm39_vm0, %v25_v0, -inf  ;;  %v40_v4 = vsel %vm39_vm0, %v23_v1, -inf  ;;  %v24_v5 = vld [vmem:[#allocation2 + $0x8] sm:$0xff]  ;;  %v27_v9 = vld [vmem:[#allocation2 + $0x20] sm:$0xff]  ;;  %vm180_vm2 = vcmask 1041409  }
  0x10   :  { %47 = vmax.xlane.f32.xlu1 %v46_v3  ;;  %41 = vmax.xlane.f32.xlu0 %v40_v4  ;;  %v49_v6 = vsel %vm39_vm0, %v26_v2, -inf  ;;  %v43_v7 = vsel %vm39_vm0, %v24_v5, -inf  ;;  %v28_v8 = vld [vmem:[#allocation2 + $0x28] sm:$0xff]  ;;  %v52_v11 = vsel %vm39_vm0, %v27_v9, -inf  ;;  %v30_v12 = vld [vmem:[#allocation2 + $0x38] sm:$0xff]  ;;  %v29_v13 = vld [vmem:[#allocation2 + $0x30] sm:$0xff] }
  0x11   :  { %v55_v10 = vsel %vm39_vm0, %v28_v8, -inf  ;;  %v61_v14 = vsel %vm39_vm0, %v30_v12, -inf  ;;  %v58_v15 = vsel %vm39_vm0, %v29_v13, -inf  ;;  %v32_v16 = vld [vmem:[#allocation2 + $0x48] sm:$0xff]  ;;  %v31_v17 = vld [vmem:[#allocation2 + $0x40] sm:$0xff]  ;;  %v34_v20 = vld [vmem:[#allocation2 + $0x58] sm:$0xff] }
  0x12   :  { %v67_v18 = vsel %vm39_vm0, %v32_v16, -inf  ;;  %v64_v19 = vsel %vm39_vm0, %v31_v17, -inf  ;;  %v33_v21 = vld [vmem:[#allocation2 + $0x50] sm:$0xff]  ;;  %v73_v22 = vsel %vm39_vm0, %v34_v20, -inf  ;;  %v36_v24 = vld [vmem:[#allocation2 + $0x68] sm:$0xff]  ;;  %v35_v25 = vld [vmem:[#allocation2 + $0x60] sm:$0xff] }
  0x13   :  { %v70_v23 = vsel %vm39_vm0, %v33_v21, -inf  ;;  %v79_v26 = vsel %vm39_vm0, %v36_v24, -inf  ;;  %v76_v27 = vsel %vm39_vm0, %v35_v25, -inf  ;;  %v38_v28 = vld [vmem:[#allocation2 + $0x78] sm:$0xff]  ;;  %v37_v29 = vld [vmem:[#allocation2 + $0x70] sm:$0xff]  ;;  %v105_v39 = vand.u32 127, %v104_v36 }
  0x14   :  { %50 = vmax.xlane.f32.xlu1 %v49_v6  ;;  %44 = vmax.xlane.f32.xlu0 %v43_v7  ;;  %v85_v30 = vsel %vm39_vm0, %v38_v28, -inf  ;;  %v82_v31 = vsel %vm39_vm0, %v37_v29, -inf  ;;  %v107_v43 = vshrl.u32 %v104_v36, 7  ;;  %vm182_vm3 = vcmask 1042434   ;;  %s262_s0 = smov [#allocation5]  }
  0x15   :  { %v110_v40 = vadd.s32 4294967288, %v105_v39  ;;  %vm184_vm4 = vcmask 1043459   ;;  %vm186_vm5 = vcmask 1044484   ;;  %vm188_vm6 = vcmask 1045509   ;;  %s202_s13 = sshll.u32 %s262_s0, 4  ;;  %s203_s13 = int_to_ptr.vmem [resolvable:$true] %s202_s13 }
  0x16   :  { %v108_v47 = vsub.s32 %v105_v39, %v107_v43  ;;  %vm190_vm7 = vcmask 1046534   ;;  %vm192_vm8 = vcmask 1047559   ;;  %s235_s14 = scalar_lea.vmem %s203_s13, 128  ;;  %p240_p6 = scmp.lt.s32.totalorder %s203_s13, %s203_s13 }
  0x17   :  { %v113_v44 = vsub.s32 %v110_v40, %v107_v43  ;;  %p236_p5 = scmp.ne.s32.totalorder %s203_s13, %s235_s14  ;;  %p241_p7 = scmp.lt.s32.totalorder %s235_s14, %s235_s14 }
  0x18   :  { %56 = vmax.xlane.f32.xlu1 %v55_v10  ;;  %53 = vmax.xlane.f32.xlu0 %v52_v11 }
  0x19   :  { %p242_p8 = por %p241_p7, %p240_p6 }
  0x1b   :  { %p243_p9 = pnand %p242_p8, %p236_p5 }
  0x1c   :  { %62 = vmax.xlane.f32.xlu1 %v61_v14  ;;  %59 = vmax.xlane.f32.xlu0 %v58_v15 }
  0x20   :  { %68 = vmax.xlane.f32.xlu1 %v67_v18  ;;  %65 = vmax.xlane.f32.xlu0 %v64_v19 }
  0x24   :  { %74 = vmax.xlane.f32.xlu1 %v73_v22  ;;  %71 = vmax.xlane.f32.xlu0 %v70_v23 }
  0x28   :  { %80 = vmax.xlane.f32.xlu1 %v79_v26  ;;  %77 = vmax.xlane.f32.xlu0 %v76_v27 }
  0x2c   :  { %86 = vmax.xlane.f32.xlu1 %v85_v30  ;;  %83 = vmax.xlane.f32.xlu0 %v82_v31 }
  0x99   :  { %v48_v32 = vpop.xlane.xlu1 %47  ;;  %v42_v33 = vpop.xlane.xlu0 %41 }
  0x9a   :  { %v120_v54 = vrot.slane %v48_v32, %v108_v47  ;;  %v109_v55 = vrot.slane %v42_v33, %v108_v47 }
  0x9d   :  { %v51_v34 = vpop.xlane.xlu1 %50  ;;  %v45_v35 = vpop.xlane.xlu0 %44 }
  0x9e   :  { %v124_v48 = vrot.slane %v51_v34, %v113_v44  ;;  %v114_v49 = vrot.slane %v45_v35, %v113_v44 }
  0xa0   :  { %v125_v60 = vsel %vm115_vm1, %v124_v48, %v120_v54  ;;  %v116_v61 = vsel %vm115_vm1, %v114_v49, %v109_v55 }
  0xa1   :  { %v57_v37 = vpop.xlane.xlu1 %56  ;;  %v54_v38 = vpop.xlane.xlu0 %53  ;;  %v181_v6 = vsel %vm180_vm2, %v125_v60, %v116_v61 }
  0xa2   :  { %v133_v50 = vrot.slane %v57_v37, %v113_v44  ;;  %v129_v51 = vrot.slane %v54_v38, %v108_v47 }
  0xa4   :  { %v134_v0 = vsel %vm115_vm1, %v133_v50, %v129_v51 }
  0xa5   :  { %v63_v41 = vpop.xlane.xlu1 %62  ;;  %v60_v42 = vpop.xlane.xlu0 %59  ;;  %v183_v8 = vsel %vm182_vm3, %v134_v0, %v181_v6 }
  0xa6   :  { %v142_v56 = vrot.slane %v63_v41, %v113_v44  ;;  %v138_v57 = vrot.slane %v60_v42, %v108_v47 }
  0xa8   :  { %v143_v3 = vsel %vm115_vm1, %v142_v56, %v138_v57 }
  0xa9   :  { %v69_v45 = vpop.xlane.xlu1 %68  ;;  %v66_v46 = vpop.xlane.xlu0 %65  ;;  %v185_v10 = vsel %vm184_vm4, %v143_v3, %v183_v8 }
  0xaa   :  { %v151_v58 = vrot.slane %v69_v45, %v113_v44  ;;  %v147_v59 = vrot.slane %v66_v46, %v108_v47 }
  0xac   :  { %v152_v7 = vsel %vm115_vm1, %v151_v58, %v147_v59 }
  0xad   :  { %v75_v52 = vpop.xlane.xlu1 %74  ;;  %v72_v53 = vpop.xlane.xlu0 %71  ;;  %v187_v14 = vsel %vm186_vm5, %v152_v7, %v185_v10 }
  0xae   :  { %v160_v62 = vrot.slane %v75_v52, %v113_v44  ;;  %v156_v63 = vrot.slane %v72_v53, %v108_v47 }
  0xb0   :  { %v161_v9 = vsel %vm115_vm1, %v160_v62, %v156_v63 }
  0xb1   :  { %v81_v1 = vpop.xlane.xlu1 %80  ;;  %v78_v2 = vpop.xlane.xlu0 %77  ;;  %v189_v17 = vsel %vm188_vm6, %v161_v9, %v187_v14 }
  0xb2   :  { %v169_v4 = vrot.slane %v81_v1, %v113_v44  ;;  %v165_v5 = vrot.slane %v78_v2, %v108_v47 }
  0xb4   :  { %v170_v11 = vsel %vm115_vm1, %v169_v4, %v165_v5 }
  0xb5   :  { %v87_v12 = vpop.xlane.xlu1 %86  ;;  %v84_v13 = vpop.xlane.xlu0 %83  ;;  %v191_v19 = vsel %vm190_vm7, %v170_v11, %v189_v17 }
  0xb6   :  { %v178_v15 = vrot.slane %v87_v12, %v113_v44  ;;  %v174_v16 = vrot.slane %v84_v13, %v108_v47 }
  0xb8   :  { %v179_v18 = vsel %vm115_vm1, %v178_v15, %v174_v16 }
  0xb9   :  { %v193_v20 = vsel %vm192_vm8, %v179_v18, %v191_v19 }
  0xba   :  { %195 = vst.msk [vmem:[#allocation5] sm:$0xff] %vm39_vm0, %v193_v20 }
  0xbb   :  { %246 = shalt.err (!%p243_p9)
}
  0xbc   :  { %205 = dma.vmem_to_hbm [thread:$0]  %s203_s13, 128, %s305_s1, [#allocation4]  }
  0xbd   :  { %257 = dma.done.wait [#allocation4], 128  }
  0xbe   :  { %258 = vsyncadd [#allocation4], 4294967168 }
  0xbf   :  { %209 = vsyncpa [#allocation3], 1 }
  0xc0   :  { %210 = vsyncpa [#allocation4], 1 }

</bundles_post_ra>
